<compile_context>
chip_gen: v5e
topology: v5e:2x2
jax: 0.10.0
libtpu: 0.0.40
codegen_flags: <defaults>
</compile_context>

<pallas_src>
from functools import partial

import jax
import jax.numpy as jnp
from jax.experimental import pallas as pl
from jax.experimental.pallas import tpu as pltpu


def _round_up(x: int, m: int) -> int:
    return (x + m - 1) // m * m


_MIB = 1024 * 1024
_FALLBACK_TILE = 512                 # tm / tn / tk for the K-tiled fallback path
_FALLBACK_VMEM_LIMIT = 32 * _MIB     # ~7 MiB of tiles, generous + safe on all gens
_TM_CANDIDATES = (512, 256, 128, 64, 32, 16, 8)


def _vmem_budget_bytes() -> int:
    """Generation-aware VMEM budget (conservative fraction of physical VMEM)."""
    cap = 64 * _MIB
    try:
        info = pltpu.get_tpu_info()
        cap = int(getattr(info, "vmem_capacity_bytes", cap) or cap)
    except Exception:
        pass
    if cap >= 96 * _MIB:       # v5e / v6e: 128 MiB physical per TensorCore
        return 80 * _MIB
    return 40 * _MIB           # v7x: 64 MiB physical per TensorCore


def _wres_fixed_bytes(K: int, N: int, w_itemsize: int) -> int:
    # Both branches' weights + biases, conservatively counted double-buffered.
    return 4 * K * N * w_itemsize + 4 * N * 4


def _choose_tm(M: int, K: int, N: int, x_itemsize: int, w_itemsize: int,
               budget: int):
    """Largest M-tile such that resident weights + streamed x/out tiles fit."""
    fixed = _wres_fixed_bytes(K, N, w_itemsize)
    cands = [c for c in _TM_CANDIDATES if c < M]
    if M <= _TM_CANDIDATES[0]:
        cands = [M] + cands          # full-M block is always layout-legal
    for tm in cands:
        rows = _round_up(tm, 8)
        per_tile = 4 * rows * (K * x_itemsize + N * 4)   # 2 branches x 2 buffers
        if fixed + per_tile <= budget:
            return tm
    return None


# ---------------------------------------------------------------------------
# Weight-resident path: grid over M only, weights stay in VMEM for the whole call.
# ---------------------------------------------------------------------------
def _wres_kernel(*refs, use_bias, cast_dtype):
    if use_bias:
        xu_ref, xv_ref, wu_ref, wv_ref, bu_ref, bv_ref, ou_ref, ov_ref = refs
    else:
        xu_ref, xv_ref, wu_ref, wv_ref, ou_ref, ov_ref = refs
        bu_ref = bv_ref = None

    def branch(x_ref, w_ref, b_ref, o_ref):
        x = x_ref[...]
        if cast_dtype is not None:
            x = x.astype(cast_dtype)           # weights already stored as cast_dtype
        y = jnp.maximum(jnp.dot(x, w_ref[...],
                                preferred_element_type=jnp.float32), 0.0)
        if b_ref is not None:
            y = y + b_ref[...].astype(jnp.float32)   # bias AFTER relu (matches torch)
        o_ref[...] = y.astype(o_ref.dtype)

    branch(xu_ref, wu_ref, bu_ref, ou_ref)
    branch(xv_ref, wv_ref, bv_ref, ov_ref)


def _fc_weight_resident(xu, xv, wu, wv, bu, bv, use_bias, cast_dtype, tm,
                        vmem_limit):
    M, K = xu.shape
    N = wu.shape[1]
    x_spec = pl.BlockSpec((tm, K), lambda i: (i, 0))
    w_spec = pl.BlockSpec((K, N), lambda i: (0, 0))   # constant index -> resident
    o_spec = pl.BlockSpec((tm, N), lambda i: (i, 0))
    in_specs = [x_spec, x_spec, w_spec, w_spec]
    arrays = [xu, xv, wu, wv]
    if use_bias:
        b_spec = pl.BlockSpec((1, N), lambda i: (0, 0))
        in_specs += [b_spec, b_spec]
        arrays += [bu, bv]

    flops = 2 * 2 * M * K * N
    bytes_accessed = (xu.dtype.itemsize * 2 * M * K
                      + wu.dtype.itemsize * 2 * K * N
                      + 4 * 2 * M * N)
    ou, ov = pl.pallas_call(
        partial(_wres_kernel, use_bias=use_bias, cast_dtype=cast_dtype),
        out_shape=(jax.ShapeDtypeStruct((M, N), xu.dtype),
                   jax.ShapeDtypeStruct((M, N), xu.dtype)),
        grid_spec=pltpu.PrefetchScalarGridSpec(
            num_scalar_prefetch=0,
            grid=(pl.cdiv(M, tm),),
            in_specs=in_specs,
            out_specs=[o_spec, o_spec]),
        compiler_params=pltpu.CompilerParams(
            dimension_semantics=("parallel",),     # M tiles shard across TCs (v7x)
            vmem_limit_bytes=int(vmem_limit)),
        cost_estimate=pl.CostEstimate(flops=int(flops), transcendentals=0,
                                      bytes_accessed=int(bytes_accessed)),
    )(*arrays)
    return ou, ov


# ---------------------------------------------------------------------------
# Fallback path (weights too large for VMEM): per-branch (M, N, K) tiled grid,
# accumulate directly into the VMEM-resident output block, finalize once.
# ---------------------------------------------------------------------------
def _tiled_kernel(*refs, use_bias, cast_dtype):
    if use_bias:
        x_ref, w_ref, b_ref, o_ref = refs
    else:
        x_ref, w_ref, o_ref = refs
        b_ref = None
    k = pl.program_id(2)

    @pl.when(k == 0)
    def _():
        o_ref[...] = jnp.zeros_like(o_ref)

    x = x_ref[...]
    if cast_dtype is not None:
        x = x.astype(cast_dtype)
    o_ref[...] += jnp.dot(x, w_ref[...],
                          preferred_element_type=jnp.float32).astype(o_ref.dtype)

    @pl.when(k == pl.num_programs(2) - 1)
    def _():
        y = jnp.maximum(o_ref[...], 0.0)          # ReLU of the FULL sum only
        if use_bias:
            y = y + b_ref[...].astype(jnp.float32)  # bias AFTER relu (torch)
        o_ref[...] = y.astype(o_ref.dtype)


def _fc_tiled_branch(x, w, b, use_bias, cast_dtype):
    M, K = x.shape
    Kp, N = w.shape          # weights were K-padded at init (zeros -> exact result)
    if Kp > K:
        x = jnp.pad(x, ((0, 0), (0, Kp - K)))    # pad only the reduction dim
    tm = M if M <= _FALLBACK_TILE else _FALLBACK_TILE
    tn = N if N <= _FALLBACK_TILE else _FALLBACK_TILE
    tk = Kp if Kp <= _FALLBACK_TILE else _FALLBACK_TILE   # Kp % tk == 0 by construction
    grid = (pl.cdiv(M, tm), pl.cdiv(N, tn), Kp // tk)

    in_specs = [pl.BlockSpec((tm, tk), lambda i, j, k: (i, k)),
                pl.BlockSpec((tk, tn), lambda i, j, k: (k, j))]
    arrays = [x, w]
    if use_bias:
        in_specs.append(pl.BlockSpec((1, tn), lambda i, j, k: (0, j)))
        arrays.append(b)

    flops = 2 * M * Kp * N
    bytes_accessed = (x.dtype.itemsize * M * Kp * pl.cdiv(N, tn)
                      + w.dtype.itemsize * Kp * N * pl.cdiv(M, tm)
                      + 4 * M * N)
    out = pl.pallas_call(
        partial(_tiled_kernel, use_bias=use_bias, cast_dtype=cast_dtype),
        out_shape=jax.ShapeDtypeStruct((M, N), x.dtype),
        grid_spec=pltpu.PrefetchScalarGridSpec(
            num_scalar_prefetch=0,
            grid=grid,
            in_specs=in_specs,
            out_specs=pl.BlockSpec((tm, tn), lambda i, j, k: (i, j))),
        compiler_params=pltpu.CompilerParams(
            dimension_semantics=("parallel", "parallel", "arbitrary"),
            vmem_limit_bytes=_FALLBACK_VMEM_LIMIT),
        cost_estimate=pl.CostEstimate(flops=int(flops), transcendentals=0,
                                      bytes_accessed=int(bytes_accessed)),
    )(*arrays)
    return out


# ---------------------------------------------------------------------------
# Module wrapper (parameter init mirrors the PyTorch module)
# ---------------------------------------------------------------------------
class FullyConnectedPallas:
    """JAX/Pallas port of the PyTorch FullyConnected module (forward only)."""

    def __init__(self, input_dim, output_dim, dropout=0.0, use_bias=False,
                 share_weight=False, compute_dtype=None, vmem_budget_bytes=None,
                 key=None):
        self.input_dim = input_dim
        self.output_dim = output_dim
        self.use_bias = use_bias
        self.dropout = dropout            # p = 0.0 -> identity (inference)
        self.share_weight = share_weight
        if key is None:
            key = jax.random.PRNGKey(0)
        k1, k2, k3, k4 = jax.random.split(key, 4)

        # xavier_uniform_: U(-limit, limit), limit = sqrt(6 / (fan_in + fan_out))
        limit = (6.0 / (input_dim + output_dim)) ** 0.5
        self.weights_u = jax.random.uniform(
            k1, (input_dim, output_dim), jnp.float32, -limit, limit)
        self.weights_v = (self.weights_u if share_weight else
                          jax.random.uniform(k2, (input_dim, output_dim),
                                             jnp.float32, -limit, limit))
        if use_bias:
            # init.normal_(std=0.5)
            self.user_bias = 0.5 * jax.random.normal(k3, (output_dim,), jnp.float32)
            self.item_bias = (self.user_bias if share_weight else
                              0.5 * jax.random.normal(k4, (output_dim,), jnp.float32))
        else:
            self.user_bias = None
            self.item_bias = None

        # ---------------- kernel-side parameter views (built once) ----------------
        self._cast_dtype = compute_dtype            # None -> exact f32 matmul
        auto_budget = _vmem_budget_bytes()
        self._budget = (min(int(vmem_budget_bytes), auto_budget)
                        if vmem_budget_bytes else auto_budget)

        w_store_dtype = compute_dtype if compute_dtype is not None else jnp.float32
        w_isz = jnp.dtype(w_store_dtype).itemsize

        # Path choice depends only on (K, N, dtype, budget) -> decided once here.
        min_per_tile = 4 * 8 * (input_dim * 4 + output_dim * 4)
        self._weight_resident = (
            _wres_fixed_bytes(input_dim, output_dim, w_isz) + min_per_tile
            <= self._budget)

        if self._weight_resident:
            self._wu = self.weights_u.astype(w_store_dtype)
            self._wv = (self._wu if share_weight
                        else self.weights_v.astype(w_store_dtype))
        else:
            # Fallback path: pad only the reduction dim K (needed for correctness).
            Kp = (input_dim if input_dim <= _FALLBACK_TILE
                  else _round_up(input_dim, _FALLBACK_TILE))
            wu = jnp.pad(self.weights_u, ((0, Kp - input_dim), (0, 0)))
            self._wu = wu.astype(w_store_dtype)
            if share_weight:
                self._wv = self._wu
            else:
                wv = jnp.pad(self.weights_v, ((0, Kp - input_dim), (0, 0)))
                self._wv = wv.astype(w_store_dtype)

        if use_bias:
            self._bu = self.user_bias.reshape(1, -1)
            self._bv = self._bu if share_weight else self.item_bias.reshape(1, -1)
        else:
            self._bu = self._bv = None

    def __call__(self, user_inputs, item_inputs):
        # TODO(synk): dropout with p > 0 (training mode) not implemented; p=0.0 is identity.
        assert user_inputs.shape == item_inputs.shape
        assert user_inputs.ndim == 2 and user_inputs.shape[1] == self.input_dim
        M = user_inputs.shape[0]

        if self._weight_resident:
            tm = _choose_tm(M, self.input_dim, self.output_dim,
                            user_inputs.dtype.itemsize, self._wu.dtype.itemsize,
                            self._budget)
            # Guaranteed non-None: the init-time feasibility check used tm=8.
            vmem_limit = max(self._budget, 16 * _MIB)
            return _fc_weight_resident(user_inputs, item_inputs,
                                       self._wu, self._wv, self._bu, self._bv,
                                       self.use_bias, self._cast_dtype, tm,
                                       vmem_limit)

        # Weights don't fit VMEM: per-branch K-tiled matmuls (no activation stacking).
        x_u = _fc_tiled_branch(user_inputs, self._wu, self._bu,
                               self.use_bias, self._cast_dtype)
        x_v = _fc_tiled_branch(item_inputs, self._wv, self._bv,
                               self.use_bias, self._cast_dtype)
        return x_u, x_v


if __name__ == "__main__":
    key = jax.random.PRNGKey(0)
    k_u, k_v, k_p1, k_p2, k_u2, k_v2 = jax.random.split(key, 6)

    # ---- small shapes: weight-resident fused path (no bias) ----
    batch, input_dim, output_dim = 8, 16, 32
    user_inputs = jax.random.normal(k_u, (batch, input_dim), jnp.float32)
    item_inputs = jax.random.normal(k_v, (batch, input_dim), jnp.float32)
    model = FullyConnectedPallas(input_dim, output_dim, dropout=0.0,
                                 use_bias=False, share_weight=False, key=k_p1)
    x_u, x_v = model(user_inputs, item_inputs)
    jax.block_until_ready((x_u, x_v))
    ref_u = jnp.maximum(user_inputs @ model.weights_u, 0.0)
    ref_v = jnp.maximum(item_inputs @ model.weights_v, 0.0)
    assert x_u.shape == (batch, output_dim) and x_v.shape == (batch, output_dim)
    assert jnp.allclose(x_u, ref_u, atol=1e-4) and jnp.allclose(x_v, ref_v, atol=1e-4)

    # ---- small shapes, with bias + shared weights (bias added AFTER relu) ----
    model_b = FullyConnectedPallas(input_dim, output_dim, dropout=0.0,
                                   use_bias=True, share_weight=True, key=k_p1)
    y_u, y_v = model_b(user_inputs, item_inputs)
    jax.block_until_ready((y_u, y_v))
    ref_bu = jnp.maximum(user_inputs @ model_b.weights_u, 0.0) + model_b.user_bias
    ref_bv = jnp.maximum(item_inputs @ model_b.weights_v, 0.0) + model_b.item_bias
    assert jnp.allclose(y_u, ref_bu, atol=1e-4) and jnp.allclose(y_v, ref_bv, atol=1e-4)

    # ---- medium, non-tile-aligned shapes: weight-resident path, full-N tiles ----
    Mb, Kb, Nb = 300, 2000, 520
    ub = jax.random.normal(k_u2, (Mb, Kb), jnp.float32)
    ib = jax.random.normal(k_v2, (Mb, Kb), jnp.float32)
    model_big = FullyConnectedPallas(Kb, Nb, dropout=0.0,
                                     use_bias=True, share_weight=False, key=k_p2)
    z_u, z_v = model_big(ub, ib)
    jax.block_until_ready((z_u, z_v))
    ref_zu = jnp.maximum(ub @ model_big.weights_u, 0.0) + model_big.user_bias
    ref_zv = jnp.maximum(ib @ model_big.weights_v, 0.0) + model_big.item_bias
    assert z_u.shape == (Mb, Nb) and z_v.shape == (Mb, Nb)
    assert jnp.allclose(z_u, ref_zu, atol=5e-2, rtol=1e-2)
    assert jnp.allclose(z_v, ref_zv, atol=5e-2, rtol=1e-2)

    # ---- force the K-tiled fallback path (tiny VMEM budget, same parameters) ----
    model_fb = FullyConnectedPallas(Kb, Nb, dropout=0.0, use_bias=True,
                                    share_weight=False, key=k_p2,
                                    vmem_budget_bytes=2 * 1024 * 1024)
    assert not model_fb._weight_resident
    f_u, f_v = model_fb(ub, ib)
    jax.block_until_ready((f_u, f_v))
    assert jnp.allclose(f_u, ref_zu, atol=5e-2, rtol=1e-2)
    assert jnp.allclose(f_v, ref_zv, atol=5e-2, rtol=1e-2)

    # ---- optional bf16-MXU variant (numerics-reviewed: loose tolerance) ----
    model_bf16 = FullyConnectedPallas(Kb, Nb, dropout=0.0, use_bias=True,
                                      share_weight=False, key=k_p2,
                                      compute_dtype=jnp.bfloat16)
    g_u, g_v = model_bf16(ub, ib)
    jax.block_until_ready((g_u, g_v))
    assert jnp.allclose(g_u, ref_zu, atol=2.5e-1, rtol=1e-1)
    assert jnp.allclose(g_v, ref_zv, atol=2.5e-1, rtol=1e-1)

    print("KERNEL_OK")
</pallas_src>

<mosaic_0001>
module attributes {stable_mosaic.version = 11 : i64} {
  func.func @_wres_kernel(%arg0: i32, %arg1: memref<8x16xf32, #tpu.memory_space<vmem>>, %arg2: memref<8x16xf32, #tpu.memory_space<vmem>>, %arg3: memref<16x32xf32, #tpu.memory_space<vmem>>, %arg4: memref<16x32xf32, #tpu.memory_space<vmem>>, %arg5: memref<8x32xf32, #tpu.memory_space<vmem>>, %arg6: memref<8x32xf32, #tpu.memory_space<vmem>>) attributes {dimension_semantics = [#tpu.dimension_semantics<parallel>], iteration_bounds = array<i64: 1>, scalar_prefetch = 0 : i64, scratch_operands = 0 : i64, tpu.core_type = #tpu.core_type<tc>, window_params = [{transform_indices = @transform_0, window_bounds = array<i64: 8, 16>}, {transform_indices = @transform_1, window_bounds = array<i64: 8, 16>}, {pipeline_mode = #tpu.pipeline_mode<synchronous>, transform_indices = @transform_2, window_bounds = array<i64: 16, 32>}, {pipeline_mode = #tpu.pipeline_mode<synchronous>, transform_indices = @transform_3, window_bounds = array<i64: 16, 32>}, {transform_indices = @transform_4, window_bounds = array<i64: 8, 32>}, {transform_indices = @transform_5, window_bounds = array<i64: 8, 32>}]} {
    %c0 = arith.constant 0 : index
    %c0_0 = arith.constant 0 : index
    %0 = vector.load %arg1[%c0, %c0_0] : memref<8x16xf32, #tpu.memory_space<vmem>>, vector<8x16xf32>
    %c0_1 = arith.constant 0 : index
    %c0_2 = arith.constant 0 : index
    %1 = vector.load %arg3[%c0_1, %c0_2] : memref<16x32xf32, #tpu.memory_space<vmem>>, vector<16x32xf32>
    %cst = arith.constant dense<0.000000e+00> : vector<8x32xf32>
    %2 = tpu.matmul %0, %1, %cst {dimension_numbers = #tpu.dot_dimension_numbers<[1], [0], [0], [1], [0, 0, 1, 1], [], []>} : vector<8x16xf32>, vector<16x32xf32>, vector<8x32xf32> -> vector<8x32xf32>
    %cst_3 = arith.constant 0.000000e+00 : f32
    %3 = vector.broadcast %cst_3 : f32 to vector<8x32xf32>
    %4 = arith.maximumf %2, %3 : vector<8x32xf32>
    %c0_4 = arith.constant 0 : index
    %c0_5 = arith.constant 0 : index
    %5 = vector.load %arg5[%c0_4, %c0_5] : memref<8x32xf32, #tpu.memory_space<vmem>>, vector<8x32xf32>
    tpu.vector_store %arg5[%c0_4, %c0_5], %4 {strides = array<i32>} : memref<8x32xf32, #tpu.memory_space<vmem>>, vector<8x32xf32>,
    %c0_6 = arith.constant 0 : index
    %c0_7 = arith.constant 0 : index
    %6 = vector.load %arg2[%c0_6, %c0_7] : memref<8x16xf32, #tpu.memory_space<vmem>>, vector<8x16xf32>
    %c0_8 = arith.constant 0 : index
    %c0_9 = arith.constant 0 : index
    %7 = vector.load %arg4[%c0_8, %c0_9] : memref<16x32xf32, #tpu.memory_space<vmem>>, vector<16x32xf32>
    %cst_10 = arith.constant dense<0.000000e+00> : vector<8x32xf32>
    %8 = tpu.matmul %6, %7, %cst_10 {dimension_numbers = #tpu.dot_dimension_numbers<[1], [0], [0], [1], [0, 0, 1, 1], [], []>} : vector<8x16xf32>, vector<16x32xf32>, vector<8x32xf32> -> vector<8x32xf32>
    %cst_11 = arith.constant 0.000000e+00 : f32
    %9 = vector.broadcast %cst_11 : f32 to vector<8x32xf32>
    %10 = arith.maximumf %8, %9 : vector<8x32xf32>
    %c0_12 = arith.constant 0 : index
    %c0_13 = arith.constant 0 : index
    %11 = vector.load %arg6[%c0_12, %c0_13] : memref<8x32xf32, #tpu.memory_space<vmem>>, vector<8x32xf32>
    tpu.vector_store %arg6[%c0_12, %c0_13], %10 {strides = array<i32>} : memref<8x32xf32, #tpu.memory_space<vmem>>, vector<8x32xf32>,
    return
  }
  func.func @transform_0(%arg0: i32) -> (i32, i32) {
    %c0_i32 = arith.constant 0 : i32
    %c0_i32_0 = arith.constant 0 : i32
    return %arg0, %c0_i32 : i32, i32
  }
  func.func @transform_1(%arg0: i32) -> (i32, i32) {
    %c0_i32 = arith.constant 0 : i32
    %c0_i32_0 = arith.constant 0 : i32
    return %arg0, %c0_i32 : i32, i32
  }
  func.func @transform_2(%arg0: i32) -> (i32, i32) {
    %c0_i32 = arith.constant 0 : i32
    %c0_i32_0 = arith.constant 0 : i32
    %c0_i32_1 = arith.constant 0 : i32
    return %c0_i32, %c0_i32_0 : i32, i32
  }
  func.func @transform_3(%arg0: i32) -> (i32, i32) {
    %c0_i32 = arith.constant 0 : i32
    %c0_i32_0 = arith.constant 0 : i32
    %c0_i32_1 = arith.constant 0 : i32
    return %c0_i32, %c0_i32_0 : i32, i32
  }
  func.func @transform_4(%arg0: i32) -> (i32, i32) {
    %c0_i32 = arith.constant 0 : i32
    %c0_i32_0 = arith.constant 0 : i32
    return %arg0, %c0_i32 : i32, i32
  }
  func.func @transform_5(%arg0: i32) -> (i32, i32) {
    %c0_i32 = arith.constant 0 : i32
    %c0_i32_0 = arith.constant 0 : i32
    return %arg0, %c0_i32 : i32, i32
  }
}

</mosaic_0001>

<bundles_post_ra>
// kernel: tpu_custom_call.1
= control target key start
LH: loop header
LB: loop body
LE: loop exit
PB: predicated region body
PF: predicated region fallthrough
CT: control target
= control target key end

     0   :  { %11 = vsyncpa [#allocation3], 0  ;;  %s393_s0 = inlined_call_operand.hbm [shape: f32[8,16], index: 0, kind: input, shape index: {}]   ;;  %s394_s1 = inlined_call_operand.hbm [shape: f32[8,16], index: 1, kind: input, shape index: {}]   ;;  %s395_s2 = inlined_call_operand.hbm [shape: f32[16,32], index: 2, kind: input, shape index: {}]   ;;  %s396_s3 = inlined_call_operand.hbm [shape: f32[16,32], index: 3, kind: input, shape index: {}]   ;;  %s397_s4 = inlined_call_operand.hbm [shape: f32[8,32], index: 4, kind: output, shape index: {0}]   ;;  %s398_s5 = inlined_call_operand.hbm [shape: f32[8,32], index: 5, kind: output, shape index: {1}]  }
   0x1   :  { %12 = vsyncpa [#allocation6], 0 }
   0x2   :  { %13 = vsyncpa [#allocation9], 0 }
   0x3   :  { %14 = vsyncpa [#allocation4], 0  ;;  %s32_s20 = sshll.u32 %s394_s1, 4  ;;  %s33_s20 = int_to_ptr.hbm [resolvable:$true] %s32_s20 }
   0x4   :  { %15 = vsyncpa [#allocation12], 0  ;;  %s337_s21 = smov [#allocation5]   ;;  %s21_s25 = sshll.u32 %s393_s0, 4  ;;  %s22_s25 = int_to_ptr.hbm [resolvable:$true] %s21_s25 }
   0x5   :  { %s34_s22 = sshll.u32 %s337_s21, 4  ;;  %s338_s26 = smov [#allocation2]   ;;  %s35_s22 = int_to_ptr.vmem [resolvable:$true] %s34_s22 }
   0x6   :  { %37 = dma.hbm_to_vmem [thread:$0]  %s33_s20, 128, %s35_s22, [#allocation6]  }
   0x7   :  { %s23_s27 = sshll.u32 %s338_s26, 4  ;;  %s42_s30 = sshll.u32 %s395_s2, 4  ;;  %s24_s27 = int_to_ptr.vmem [resolvable:$true] %s23_s27  ;;  %s43_s30 = int_to_ptr.hbm [resolvable:$true] %s42_s30 }
   0x8   :  { %26 = dma.hbm_to_vmem [thread:$0]  %s22_s25, 128, %s24_s27, [#allocation3]  }
   0x9   :  { %s339_s1 = smov [#allocation7]   ;;  %s55_s9 = sshll.u32 %s396_s3, 4  ;;  %s56_s9 = int_to_ptr.hbm [resolvable:$true] %s55_s9 }
   0xa   :  { %s44_s6 = sshll.u32 %s339_s1, 4  ;;  %s340_s10 = smov 128   ;;  %s45_s6 = int_to_ptr.vmem [resolvable:$true] %s44_s6 }
   0xb   :  { %s341_s0 = smov 8   ;;  %s342_s11 = smov [#allocation8]  }
   0xc   :  { %50 = dma.hbm_to_vmem [thread:$0]  %s43_s30, 256, %s45_s6, [#allocation6], %s340_s10, %s340_s10, %s341_s0  }
   0xd   :  { %s57_s12 = sshll.u32 %s342_s11, 4  ;;  %s58_s12 = int_to_ptr.vmem [resolvable:$true] %s57_s12 }
   0xe   :  { %63 = dma.hbm_to_vmem [thread:$0]  %s56_s9, 256, %s58_s12, [#allocation9], %s340_s10, %s340_s10, %s341_s0  }
   0xf   :  { %327 = dma.done.wait [#allocation3], 128  }
  0x10   :  { %328 = vsyncadd [#allocation3], 4294967168 }
  0x11   :  { %329 = dma.done.wait [#allocation6], 384  }
  0x12   :  { %330 = vsyncadd [#allocation6], 4294966912 }
  0x13   :  { %331 = dma.done.wait [#allocation9], 256  }
  0x14   :  { %332 = vsyncadd [#allocation9], 4294967040  ;;  %v82_v0 = vld [vmem:[#allocation7 + $0x8] sm:$0xff]  ;;  %v112_v1 = vld [vmem:[#allocation8 + $0x8] sm:$0xff]  ;;  %vm83_vm0 = vcmask 130048   ;;  %s343_s2 = smov [#allocation10]  }
  0x15   :  { %v81_v2 = vld [vmem:[#allocation7] sm:$0xff]  ;;  %101 = vmatpush.msra.mxu0 %v82_v0  ;;  %130 = vmatpush.msra.mxu1 %v112_v1  ;;  %v111_v3 = vld [vmem:[#allocation8] sm:$0xff]  ;;  %v110_v5 = vld [vmem:[#allocation5] sm:$0xff]  ;;  %s143_s3 = sshll.u32 %s343_s2, 4  ;;  %s145_s15 = sshll.u32 %s397_s4, 4  ;;  %vm108_vm1 = vcmask 261120   ;;  %s144_s3 = int_to_ptr.vmem [resolvable:$true] %s143_s3  ;;  %s146_s15 = int_to_ptr.hbm [resolvable:$true] %s145_s15 }
  0x16   :  { %v80_v4 = vld [vmem:[#allocation2] sm:$0xff]  ;;  %s344_s16 = smov [#allocation11]   ;;  %s156_s20 = sshll.u32 %s398_s5, 4  ;;  %s157_s20 = int_to_ptr.hbm [resolvable:$true] %s156_s20 }
  0x17   :  { %102 = vmatpush.msra.mxu0 %v81_v2  ;;  %131 = vmatpush.msra.mxu1 %v111_v3  ;;  %s154_s17 = sshll.u32 %s344_s16, 4  ;;  %s155_s17 = int_to_ptr.vmem [resolvable:$true] %s154_s17 }
  0x18   :  { %173 = vmatmul.msk.f32.vlgmr.msra.gmra.mxu0 %vm83_vm0, %v80_v4  ;;  %174 = vmatmul.msk.f32.vlgmr.msra.gmra.mxu1 %vm83_vm0, %v110_v5 }
  0x95   :  { %v104_v6 = vpop.f32.mrf.mxu0  ;;  %v133_v7 = vpop.f32.mrf.mxu1 }
  0x96   :  { %v107_v8 = vmax.f32 %v104_v6, 0.0  ;;  %v136_v9 = vmax.f32 %v133_v7, 0.0 }
  0x98   :  { %109 = vst.msk [vmem:[#allocation10] sm:$0xff] %vm108_vm1, %v107_v8 }
  0x99   :  { %148 = dma.vmem_to_hbm [thread:$0]  %s144_s3, 128, %s146_s15, [#allocation4]   ;;  %137 = vst.msk [vmem:[#allocation11] sm:$0xff] %vm108_vm1, %v136_v9 }
  0x9a   :  { %159 = dma.vmem_to_hbm [thread:$0]  %s155_s17, 128, %s157_s20, [#allocation12]  }
  0x9b   :  { %333 = dma.done.wait [#allocation4], 128  }
  0x9c   :  { %334 = vsyncadd [#allocation4], 4294967168 }
  0x9d   :  { %335 = dma.done.wait [#allocation12], 128  }
  0x9e   :  { %336 = vsyncadd [#allocation12], 4294967168 }
  0x9f   :  { %168 = vsyncpa [#allocation3], 1 }
  0xa0   :  { %169 = vsyncpa [#allocation6], 1 }
  0xa1   :  { %170 = vsyncpa [#allocation9], 1 }
  0xa2   :  { %171 = vsyncpa [#allocation4], 1 }
  0xa3   :  { %172 = vsyncpa [#allocation12], 1 }

</bundles_post_ra>
